<compile_context>
chip_gen: v7x
topology: tpu7x:2x2x1
jax: 0.10.0
libtpu: 0.0.40
codegen_flags: <defaults>
</compile_context>

<pallas_src>
import functools

import jax
import jax.numpy as jnp
from jax.experimental import pallas as pl
from jax.experimental.pallas import tpu as pltpu


# --------------------------------------------------------------------------
# helpers
# --------------------------------------------------------------------------
def _round_up(x, m):
    return ((x + m - 1) // m) * m


def _pad2d(a, rows, cols):
    return jnp.pad(a, ((0, rows - a.shape[0]), (0, cols - a.shape[1])))


def _elu(v):
    # ELU(alpha=1) == max(v, exp(min(v, 0)) - 1).  Mathematically identical to
    # where(v > 0, v, exp(v) - 1); single max instead of compare+select, and
    # the EUP only ever sees the non-positive branch.  ELU(0) == 0, so zero
    # padding survives every layer.
    return jnp.maximum(v, jnp.exp(jnp.minimum(v, 0.0)) - 1.0)


def _pad_cast_obs(x_ref, xpad_ref):
    """Cast the obs tile to bf16 and zero-pad its feature dim to a lane
    multiple entirely inside VMEM (no wrapper-side HBM pad/cast round trip).
    The matching padded weight rows are zero, so padded lanes are inert."""
    d = x_ref.shape[-1]
    tb, dp = xpad_ref.shape
    x_bf16 = x_ref[...].astype(jnp.bfloat16)
    if d == dp:                       # already lane-aligned: scratch unused
        return x_bf16
    xpad_ref[...] = jnp.zeros((tb, dp), jnp.bfloat16)
    xpad_ref[:, :d] = x_bf16
    return xpad_ref[...]


def _mlp4_body(x_bf16, w1, b1, w2, b2, w3, b3, w4, b4):
    """(Linear+ELU) x3 + Linear.  bf16 MXU inputs, f32 accumulation + f32
    bias add, elementwise ELU chain in bf16."""
    h = jnp.dot(x_bf16, w1, preferred_element_type=jnp.float32) + b1
    h = _elu(h.astype(jnp.bfloat16))
    h = jnp.dot(h, w2, preferred_element_type=jnp.float32) + b2
    h = _elu(h.astype(jnp.bfloat16))
    h = jnp.dot(h, w3, preferred_element_type=jnp.float32) + b3
    h = _elu(h.astype(jnp.bfloat16))
    return jnp.dot(h, w4, preferred_element_type=jnp.float32) + b4


# --------------------------------------------------------------------------
# kernels
# --------------------------------------------------------------------------
def _mlp4_kernel(x_ref,
                 w1_ref, b1_ref, w2_ref, b2_ref,
                 w3_ref, b3_ref, w4_ref, b4_ref,
                 o_ref, xpad_ref):
    x = _pad_cast_obs(x_ref, xpad_ref)
    o_ref[...] = _mlp4_body(
        x,
        w1_ref[...], b1_ref[...], w2_ref[...], b2_ref[...],
        w3_ref[...], b3_ref[...], w4_ref[...], b4_ref[...],
    ).astype(o_ref.dtype)


def _actor_critic_kernel(xa_ref, xc_ref,
                         aw1_ref, ab1_ref, aw2_ref, ab2_ref,
                         aw3_ref, ab3_ref, aw4_ref, ab4_ref,
                         cw1_ref, cb1_ref, cw2_ref, cb2_ref,
                         cw3_ref, cb3_ref, cw4_ref, cb4_ref,
                         out_ref, xa_pad_ref, xc_pad_ref):
    na = aw4_ref.shape[1]             # padded actor output width (static)
    mean = _mlp4_body(
        _pad_cast_obs(xa_ref, xa_pad_ref),
        aw1_ref[...], ab1_ref[...], aw2_ref[...], ab2_ref[...],
        aw3_ref[...], ab3_ref[...], aw4_ref[...], ab4_ref[...])
    value = _mlp4_body(
        _pad_cast_obs(xc_ref, xc_pad_ref),
        cw1_ref[...], cb1_ref[...], cw2_ref[...], cb2_ref[...],
        cw3_ref[...], cb3_ref[...], cw4_ref[...], cb4_ref[...])
    # Pack both heads into one lane-dense bf16 slab (single output stream,
    # lane offsets 0 and `na` are both 128-multiples -> unmasked stores).
    out_ref[:, :na] = mean.astype(out_ref.dtype)
    out_ref[:, na:] = value.astype(out_ref.dtype)


# --------------------------------------------------------------------------
# wrappers
# --------------------------------------------------------------------------
_VMEM_LIMIT = 32 * 1024 * 1024   # explicit scoped-VMEM budget (safe on v5e..v7x)


def _pdims_from_packed(packed):
    ws = packed[0::2]
    return [ws[0].shape[0]] + [w.shape[1] for w in ws]


def _layer_specs(pdims):
    """Weight/bias BlockSpecs: full arrays, constant index_map -> VMEM-resident
    across grid steps (never re-DMA'd)."""
    specs = []
    for i in range(len(pdims) - 1):
        specs.append(pl.BlockSpec((pdims[i], pdims[i + 1]), lambda g: (0, 0)))
        specs.append(pl.BlockSpec((1, pdims[i + 1]), lambda g: (0, 0)))
    return specs


def _mlp_cost(Bp, d_obs, pdims):
    wsum = sum(pdims[i] * pdims[i + 1] for i in range(len(pdims) - 1))
    flops = 2 * Bp * wsum
    transcendentals = Bp * sum(pdims[1:-1])          # 3 ELU layers (neg branch exp)
    bytes_accessed = (Bp * d_obs * 4                 # f32 obs in (unpadded)
                      + wsum * 2                     # bf16 weights
                      + sum(pdims[1:]) * 4           # f32 biases
                      + Bp * pdims[-1] * 2)          # bf16 output
    return flops, transcendentals, bytes_accessed


def _tile_and_pad(B, tile_b):
    """Batch tile (multiple of 16 for bf16 sublane packing) and padded batch.
    Prefer a grid of >= 2 steps so both v7x TensorCores get work."""
    b16 = _round_up(B, 16)
    tb = min(_round_up(tile_b, 16), b16)
    if tb == b16 and b16 >= 32:
        tb = _round_up(b16 // 2, 16)
    Bp = _round_up(B, tb)
    return tb, Bp


def _pad_batch(x, Bp):
    B = x.shape[0]
    if Bp != B:
        x = jnp.pad(x, ((0, Bp - B), (0, 0)))
    return x


@functools.partial(jax.jit, static_argnames=("out_dim", "tile_b"))
def mlp_forward_pallas(x, packed_params, out_dim, tile_b=1024):
    """Fused 4-layer MLP.  packed_params = (w1,b1,...,w4,b4), pre-padded."""
    B, d_obs = x.shape
    pdims = _pdims_from_packed(packed_params)
    tb, Bp = _tile_and_pad(B, tile_b)
    x_p = _pad_batch(x, Bp)

    flops, trans, nbytes = _mlp_cost(Bp, d_obs, pdims)
    out = pl.pallas_call(
        _mlp4_kernel,
        out_shape=jax.ShapeDtypeStruct((Bp, pdims[-1]), jnp.bfloat16),
        grid=(Bp // tb,),
        in_specs=[pl.BlockSpec((tb, d_obs), lambda g: (g, 0))]
                 + _layer_specs(pdims),
        out_specs=pl.BlockSpec((tb, pdims[-1]), lambda g: (g, 0)),
        scratch_shapes=[pltpu.VMEM((tb, pdims[0]), jnp.bfloat16)],
        compiler_params=pltpu.CompilerParams(
            dimension_semantics=("parallel",),
            vmem_limit_bytes=_VMEM_LIMIT),
        cost_estimate=pl.CostEstimate(flops=flops, transcendentals=trans,
                                      bytes_accessed=nbytes),
    )(x_p, *packed_params)

    return out[:B, :out_dim].astype(jnp.float32)


@functools.partial(jax.jit, static_argnames=("num_actions", "tile_b"))
def actor_critic_forward_pallas(actor_obs, critic_obs,
                                actor_packed, critic_packed,
                                num_actions, tile_b=1024):
    """Single pallas_call producing both actions_mean and value (packed slab)."""
    B, da = actor_obs.shape
    _, dc = critic_obs.shape
    a_pdims = _pdims_from_packed(actor_packed)
    c_pdims = _pdims_from_packed(critic_packed)
    tb, Bp = _tile_and_pad(B, tile_b)

    xa_p = _pad_batch(actor_obs, Bp)
    xc_p = _pad_batch(critic_obs, Bp)

    na_pad = a_pdims[-1]
    out_w = a_pdims[-1] + c_pdims[-1]

    fa, ta, ba = _mlp_cost(Bp, da, a_pdims)
    fc, tc, bc = _mlp_cost(Bp, dc, c_pdims)

    out = pl.pallas_call(
        _actor_critic_kernel,
        out_shape=jax.ShapeDtypeStruct((Bp, out_w), jnp.bfloat16),
        grid=(Bp // tb,),
        in_specs=[pl.BlockSpec((tb, da), lambda g: (g, 0)),
                  pl.BlockSpec((tb, dc), lambda g: (g, 0))]
                 + _layer_specs(a_pdims) + _layer_specs(c_pdims),
        out_specs=pl.BlockSpec((tb, out_w), lambda g: (g, 0)),
        scratch_shapes=[pltpu.VMEM((tb, a_pdims[0]), jnp.bfloat16),
                        pltpu.VMEM((tb, c_pdims[0]), jnp.bfloat16)],
        compiler_params=pltpu.CompilerParams(
            dimension_semantics=("parallel",),
            vmem_limit_bytes=_VMEM_LIMIT),
        cost_estimate=pl.CostEstimate(flops=fa + fc, transcendentals=ta + tc,
                                      bytes_accessed=ba + bc),
    )(xa_p, xc_p, *actor_packed, *critic_packed)

    mean = out[:B, :num_actions].astype(jnp.float32)
    value = out[:B, na_pad:na_pad + 1].astype(jnp.float32)
    return mean, value


# --------------------------------------------------------------------------
# module
# --------------------------------------------------------------------------
class MYActorCriticPallas:
    """JAX/Pallas port of MYActorCritic (actor + critic MLP forward passes).

    Prefer `act_and_evaluate` per RL step: one launch computes both heads,
    halving fixed overheads and giving the scheduler two independent chains."""

    def __init__(self, num_actor_obs, num_critic_obs, num_actions,
                 actor_hidden_dims=(256, 256, 256),
                 critic_hidden_dims=(256, 256, 256),
                 init_noise_std=1.0, key=None, tile_b=1024):
        if key is None:
            key = jax.random.PRNGKey(0)

        def build_mlp(key, in_dim, hidden, out_dim):
            sizes = [in_dim] + list(hidden) + [out_dim]
            params = []
            for i in range(len(sizes) - 1):
                key, kw, kb = jax.random.split(key, 3)
                bound = 1.0 / float(sizes[i]) ** 0.5   # torch.nn.Linear default init
                w = jax.random.uniform(kw, (sizes[i], sizes[i + 1]),
                                       minval=-bound, maxval=bound,
                                       dtype=jnp.float32)
                b = jax.random.uniform(kb, (sizes[i + 1],),
                                       minval=-bound, maxval=bound,
                                       dtype=jnp.float32)
                params.append((w, b))
            return key, params

        key, self.actor_params = build_mlp(key, num_actor_obs,
                                           actor_hidden_dims, num_actions)
        key, self.critic_params = build_mlp(key, num_critic_obs,
                                            critic_hidden_dims, 1)

        # Pad + cast ONCE at init (bf16 weights, f32 (1, d) biases).
        self.actor_packed = self._pack_params(self.actor_params)
        self.critic_packed = self._pack_params(self.critic_params)

        self.num_actions = num_actions
        self.tile_b = tile_b
        self.std = init_noise_std * jnp.ones((num_actions,), jnp.float32)

    @staticmethod
    def _pack_params(params):
        dims = [params[0][0].shape[0]] + [w.shape[1] for (w, _) in params]
        pdims = [_round_up(d, 128) for d in dims]
        packed = []
        for i, (w, b) in enumerate(params):
            w_p = _pad2d(w.astype(jnp.float32), pdims[i], pdims[i + 1])
            b_p = _pad2d(b.astype(jnp.float32)[None, :], 1, pdims[i + 1])
            packed += [w_p.astype(jnp.bfloat16), b_p]
        return tuple(packed)

    def act_inference(self, observations):
        return mlp_forward_pallas(observations, self.actor_packed,
                                  self.num_actions, tile_b=self.tile_b)

    def evaluate(self, critic_observations):
        # NOTE: value head runs through bf16 matmul inputs + bf16 writeback;
        # final result is upcast to f32 for callers.
        return mlp_forward_pallas(critic_observations, self.critic_packed, 1,
                                  tile_b=self.tile_b)

    def act_and_evaluate(self, actor_obs, critic_obs):
        """Fused single-launch path (preferred): returns (actions_mean, value)."""
        return actor_critic_forward_pallas(actor_obs, critic_obs,
                                           self.actor_packed,
                                           self.critic_packed,
                                           self.num_actions,
                                           tile_b=self.tile_b)

    def action_std(self, actions_mean):
        # Normal(mean, mean*0 + std).stddev
        return jnp.broadcast_to(self.std, actions_mean.shape)


# --------------------------------------------------------------------------
# references for correctness checks
# --------------------------------------------------------------------------
def _mlp_reference_f32(x, params):
    h = x.astype(jnp.float32)
    n = len(params)
    for i, (w, b) in enumerate(params):
        h = h @ w + b
        if i != n - 1:
            h = jnp.where(h > 0, h, jnp.exp(jnp.minimum(h, 0.0)) - 1.0)
    return h


def _mlp_reference_bf16(x, params):
    # Mirrors the kernel numerics: bf16 dot inputs, f32 accumulation + bias,
    # bf16 ELU chain, bf16 final writeback.
    h = x.astype(jnp.bfloat16)
    n = len(params)
    for i, (w, b) in enumerate(params):
        h = jnp.dot(h, w.astype(jnp.bfloat16),
                    preferred_element_type=jnp.float32) + b
        if i != n - 1:
            hb = h.astype(jnp.bfloat16)
            h = jnp.maximum(hb, jnp.exp(jnp.minimum(hb, 0.0)) - 1.0)
        else:
            h = h.astype(jnp.bfloat16)
    return h.astype(jnp.float32)


if __name__ == "__main__":
    key = jax.random.PRNGKey(0)
    k_obs_a, k_obs_c, k_model, k_big_a, k_big_c = jax.random.split(key, 5)

    batch = 4
    num_actor_obs = 16
    num_critic_obs = 20
    num_actions = 8
    hidden = (32, 32, 32)

    model = MYActorCriticPallas(num_actor_obs, num_critic_obs, num_actions,
                                actor_hidden_dims=hidden,
                                critic_hidden_dims=hidden,
                                key=k_model)

    actor_obs = jax.random.normal(k_obs_a, (batch, num_actor_obs), jnp.float32)
    critic_obs = jax.random.normal(k_obs_c, (batch, num_critic_obs), jnp.float32)

    # Separate-launch path.
    actions_mean = jax.block_until_ready(model.act_inference(actor_obs))
    value = jax.block_until_ready(model.evaluate(critic_obs))

    # Fused single-launch path (preferred per RL step).
    mean_f, value_f = model.act_and_evaluate(actor_obs, critic_obs)
    mean_f = jax.block_until_ready(mean_f)
    value_f = jax.block_until_ready(value_f)

    assert actions_mean.shape == (batch, num_actions)
    assert value.shape == (batch, 1)
    assert mean_f.shape == (batch, num_actions)
    assert value_f.shape == (batch, 1)

    # Numerics check vs a bf16-mirroring reference.
    ref_mean_bf16 = _mlp_reference_bf16(actor_obs, model.actor_params)
    ref_value_bf16 = _mlp_reference_bf16(critic_obs, model.critic_params)
    assert jnp.allclose(actions_mean, ref_mean_bf16, atol=5e-2, rtol=5e-2)
    assert jnp.allclose(value, ref_value_bf16, atol=5e-2, rtol=5e-2)
    assert jnp.allclose(mean_f, ref_mean_bf16, atol=5e-2, rtol=5e-2)
    assert jnp.allclose(value_f, ref_value_bf16, atol=5e-2, rtol=5e-2)

    # Loose semantic check vs the pure-f32 PyTorch-equivalent math.
    ref_mean_f32 = _mlp_reference_f32(actor_obs, model.actor_params)
    ref_value_f32 = _mlp_reference_f32(critic_obs, model.critic_params)
    assert jnp.allclose(actions_mean, ref_mean_f32, atol=1e-1, rtol=1e-1)
    assert jnp.allclose(value, ref_value_f32, atol=1e-1, rtol=1e-1)

    # Multi-step grid + batch-pad path (exercises grid >= 2 and padded rows).
    big_b = 40
    big_a = jax.random.normal(k_big_a, (big_b, num_actor_obs), jnp.float32)
    big_c = jax.random.normal(k_big_c, (big_b, num_critic_obs), jnp.float32)
    mean_b, value_b = model.act_and_evaluate(big_a, big_c)
    mean_b = jax.block_until_ready(mean_b)
    value_b = jax.block_until_ready(value_b)
    assert mean_b.shape == (big_b, num_actions)
    assert value_b.shape == (big_b, 1)
    assert jnp.allclose(mean_b, _mlp_reference_bf16(big_a, model.actor_params),
                        atol=5e-2, rtol=5e-2)
    assert jnp.allclose(value_b, _mlp_reference_bf16(big_c, model.critic_params),
                        atol=5e-2, rtol=5e-2)

    # Distribution std glue.
    std = model.action_std(actions_mean)
    assert std.shape == actions_mean.shape

    print("KERNEL_OK")
</pallas_src>

<mosaic_0001>
module attributes {stable_mosaic.version = 11 : i64} {
  func.func @_mlp4_kernel(%arg0: i32, %arg1: memref<16x16xf32, #tpu.memory_space<vmem>>, %arg2: memref<128x128xbf16, #tpu.memory_space<vmem>>, %arg3: memref<1x128xf32, #tpu.memory_space<vmem>>, %arg4: memref<128x128xbf16, #tpu.memory_space<vmem>>, %arg5: memref<1x128xf32, #tpu.memory_space<vmem>>, %arg6: memref<128x128xbf16, #tpu.memory_space<vmem>>, %arg7: memref<1x128xf32, #tpu.memory_space<vmem>>, %arg8: memref<128x128xbf16, #tpu.memory_space<vmem>>, %arg9: memref<1x128xf32, #tpu.memory_space<vmem>>, %arg10: memref<16x128xbf16, #tpu.memory_space<vmem>>, %arg11: memref<16x128xbf16, #tpu.memory_space<vmem>>) attributes {dimension_semantics = [#tpu.dimension_semantics<parallel>], iteration_bounds = array<i64: 1>, scalar_prefetch = 0 : i64, scratch_operands = 1 : i64, tpu.core_type = #tpu.core_type<tc>, window_params = [{transform_indices = @transform_0, window_bounds = array<i64: 16, 16>}, {pipeline_mode = #tpu.pipeline_mode<synchronous>, transform_indices = @transform_1, window_bounds = array<i64: 128, 128>}, {pipeline_mode = #tpu.pipeline_mode<synchronous>, transform_indices = @transform_2, window_bounds = array<i64: 1, 128>}, {pipeline_mode = #tpu.pipeline_mode<synchronous>, transform_indices = @transform_3, window_bounds = array<i64: 128, 128>}, {pipeline_mode = #tpu.pipeline_mode<synchronous>, transform_indices = @transform_4, window_bounds = array<i64: 1, 128>}, {pipeline_mode = #tpu.pipeline_mode<synchronous>, transform_indices = @transform_5, window_bounds = array<i64: 128, 128>}, {pipeline_mode = #tpu.pipeline_mode<synchronous>, transform_indices = @transform_6, window_bounds = array<i64: 1, 128>}, {pipeline_mode = #tpu.pipeline_mode<synchronous>, transform_indices = @transform_7, window_bounds = array<i64: 128, 128>}, {pipeline_mode = #tpu.pipeline_mode<synchronous>, transform_indices = @transform_8, window_bounds = array<i64: 1, 128>}, {transform_indices = @transform_9, window_bounds = array<i64: 16, 128>}]} {
    %c0 = arith.constant 0 : index
    %c0_0 = arith.constant 0 : index
    %0 = vector.load %arg1[%c0, %c0_0] : memref<16x16xf32, #tpu.memory_space<vmem>>, vector<16x16xf32>
    %1 = arith.truncf %0 : vector<16x16xf32> to vector<16x16xbf16>
    %cst = arith.constant 0.000000e+00 : bf16
    %2 = vector.broadcast %cst : bf16 to vector<16x128xbf16>
    %c0_1 = arith.constant 0 : index
    %c0_2 = arith.constant 0 : index
    %3 = vector.load %arg11[%c0_1, %c0_2] : memref<16x128xbf16, #tpu.memory_space<vmem>>, vector<16x128xbf16>
    tpu.vector_store %arg11[%c0_1, %c0_2], %2 {strides = array<i32>} : memref<16x128xbf16, #tpu.memory_space<vmem>>, vector<16x128xbf16>,
    %c0_3 = arith.constant 0 : index
    %c0_4 = arith.constant 0 : index
    %4 = vector.load %arg11[%c0_3, %c0_4] : memref<16x128xbf16, #tpu.memory_space<vmem>>, vector<16x16xbf16>
    tpu.vector_store %arg11[%c0_3, %c0_4], %1 {strides = array<i32>} : memref<16x128xbf16, #tpu.memory_space<vmem>>, vector<16x16xbf16>,
    %c0_5 = arith.constant 0 : index
    %c0_6 = arith.constant 0 : index
    %5 = vector.load %arg11[%c0_5, %c0_6] : memref<16x128xbf16, #tpu.memory_space<vmem>>, vector<16x128xbf16>
    %c0_7 = arith.constant 0 : index
    %c0_8 = arith.constant 0 : index
    %6 = vector.load %arg2[%c0_7, %c0_8] : memref<128x128xbf16, #tpu.memory_space<vmem>>, vector<128x128xbf16>
    %c0_9 = arith.constant 0 : index
    %c0_10 = arith.constant 0 : index
    %7 = vector.load %arg3[%c0_9, %c0_10] : memref<1x128xf32, #tpu.memory_space<vmem>>, vector<1x128xf32>
    %c0_11 = arith.constant 0 : index
    %c0_12 = arith.constant 0 : index
    %8 = vector.load %arg4[%c0_11, %c0_12] : memref<128x128xbf16, #tpu.memory_space<vmem>>, vector<128x128xbf16>
    %c0_13 = arith.constant 0 : index
    %c0_14 = arith.constant 0 : index
    %9 = vector.load %arg5[%c0_13, %c0_14] : memref<1x128xf32, #tpu.memory_space<vmem>>, vector<1x128xf32>
    %c0_15 = arith.constant 0 : index
    %c0_16 = arith.constant 0 : index
    %10 = vector.load %arg6[%c0_15, %c0_16] : memref<128x128xbf16, #tpu.memory_space<vmem>>, vector<128x128xbf16>
    %c0_17 = arith.constant 0 : index
    %c0_18 = arith.constant 0 : index
    %11 = vector.load %arg7[%c0_17, %c0_18] : memref<1x128xf32, #tpu.memory_space<vmem>>, vector<1x128xf32>
    %c0_19 = arith.constant 0 : index
    %c0_20 = arith.constant 0 : index
    %12 = vector.load %arg8[%c0_19, %c0_20] : memref<128x128xbf16, #tpu.memory_space<vmem>>, vector<128x128xbf16>
    %c0_21 = arith.constant 0 : index
    %c0_22 = arith.constant 0 : index
    %13 = vector.load %arg9[%c0_21, %c0_22] : memref<1x128xf32, #tpu.memory_space<vmem>>, vector<1x128xf32>
    %cst_23 = arith.constant dense<0.000000e+00> : vector<16x128xf32>
    %14 = tpu.matmul %5, %6, %cst_23 {dimension_numbers = #tpu.dot_dimension_numbers<[1], [0], [0], [1], [0, 0, 1, 1], [], []>} : vector<16x128xbf16>, vector<128x128xbf16>, vector<16x128xf32> -> vector<16x128xf32>
    %15 = vector.broadcast %7 : vector<1x128xf32> to vector<16x128xf32>
    %16 = arith.addf %14, %15 : vector<16x128xf32>
    %17 = arith.truncf %16 : vector<16x128xf32> to vector<16x128xbf16>
    %cst_24 = arith.constant 0.000000e+00 : bf16
    %18 = vector.broadcast %cst_24 : bf16 to vector<16x128xbf16>
    %19 = arith.minimumf %17, %18 : vector<16x128xbf16>
    %20 = math.exp %19 : vector<16x128xbf16>
    %cst_25 = arith.constant 1.000000e+00 : bf16
    %21 = vector.broadcast %cst_25 : bf16 to vector<16x128xbf16>
    %22 = arith.subf %20, %21 : vector<16x128xbf16>
    %23 = arith.maximumf %17, %22 : vector<16x128xbf16>
    %cst_26 = arith.constant dense<0.000000e+00> : vector<16x128xf32>
    %24 = tpu.matmul %23, %8, %cst_26 {dimension_numbers = #tpu.dot_dimension_numbers<[1], [0], [0], [1], [0, 0, 1, 1], [], []>} : vector<16x128xbf16>, vector<128x128xbf16>, vector<16x128xf32> -> vector<16x128xf32>
    %25 = vector.broadcast %9 : vector<1x128xf32> to vector<16x128xf32>
    %26 = arith.addf %24, %25 : vector<16x128xf32>
    %27 = arith.truncf %26 : vector<16x128xf32> to vector<16x128xbf16>
    %cst_27 = arith.constant 0.000000e+00 : bf16
    %28 = vector.broadcast %cst_27 : bf16 to vector<16x128xbf16>
    %29 = arith.minimumf %27, %28 : vector<16x128xbf16>
    %30 = math.exp %29 : vector<16x128xbf16>
    %cst_28 = arith.constant 1.000000e+00 : bf16
    %31 = vector.broadcast %cst_28 : bf16 to vector<16x128xbf16>
    %32 = arith.subf %30, %31 : vector<16x128xbf16>
    %33 = arith.maximumf %27, %32 : vector<16x128xbf16>
    %cst_29 = arith.constant dense<0.000000e+00> : vector<16x128xf32>
    %34 = tpu.matmul %33, %10, %cst_29 {dimension_numbers = #tpu.dot_dimension_numbers<[1], [0], [0], [1], [0, 0, 1, 1], [], []>} : vector<16x128xbf16>, vector<128x128xbf16>, vector<16x128xf32> -> vector<16x128xf32>
    %35 = vector.broadcast %11 : vector<1x128xf32> to vector<16x128xf32>
    %36 = arith.addf %34, %35 : vector<16x128xf32>
    %37 = arith.truncf %36 : vector<16x128xf32> to vector<16x128xbf16>
    %cst_30 = arith.constant 0.000000e+00 : bf16
    %38 = vector.broadcast %cst_30 : bf16 to vector<16x128xbf16>
    %39 = arith.minimumf %37, %38 : vector<16x128xbf16>
    %40 = math.exp %39 : vector<16x128xbf16>
    %cst_31 = arith.constant 1.000000e+00 : bf16
    %41 = vector.broadcast %cst_31 : bf16 to vector<16x128xbf16>
    %42 = arith.subf %40, %41 : vector<16x128xbf16>
    %43 = arith.maximumf %37, %42 : vector<16x128xbf16>
    %cst_32 = arith.constant dense<0.000000e+00> : vector<16x128xf32>
    %44 = tpu.matmul %43, %12, %cst_32 {dimension_numbers = #tpu.dot_dimension_numbers<[1], [0], [0], [1], [0, 0, 1, 1], [], []>} : vector<16x128xbf16>, vector<128x128xbf16>, vector<16x128xf32> -> vector<16x128xf32>
    %45 = vector.broadcast %13 : vector<1x128xf32> to vector<16x128xf32>
    %46 = arith.addf %44, %45 : vector<16x128xf32>
    %47 = arith.truncf %46 : vector<16x128xf32> to vector<16x128xbf16>
    %c0_33 = arith.constant 0 : index
    %c0_34 = arith.constant 0 : index
    %48 = vector.load %arg10[%c0_33, %c0_34] : memref<16x128xbf16, #tpu.memory_space<vmem>>, vector<16x128xbf16>
    tpu.vector_store %arg10[%c0_33, %c0_34], %47 {strides = array<i32>} : memref<16x128xbf16, #tpu.memory_space<vmem>>, vector<16x128xbf16>,
    return
  }
  func.func @transform_0(%arg0: i32) -> (i32, i32) {
    %c0_i32 = arith.constant 0 : i32
    %c0_i32_0 = arith.constant 0 : i32
    return %arg0, %c0_i32 : i32, i32
  }
  func.func @transform_1(%arg0: i32) -> (i32, i32) {
    %c0_i32 = arith.constant 0 : i32
    %c0_i32_0 = arith.constant 0 : i32
    %c0_i32_1 = arith.constant 0 : i32
    return %c0_i32, %c0_i32_0 : i32, i32
  }
  func.func @transform_2(%arg0: i32) -> (i32, i32) {
    %c0_i32 = arith.constant 0 : i32
    %c0_i32_0 = arith.constant 0 : i32
    %c0_i32_1 = arith.constant 0 : i32
    return %c0_i32, %c0_i32_0 : i32, i32
  }
  func.func @transform_3(%arg0: i32) -> (i32, i32) {
    %c0_i32 = arith.constant 0 : i32
    %c0_i32_0 = arith.constant 0 : i32
    %c0_i32_1 = arith.constant 0 : i32
    return %c0_i32, %c0_i32_0 : i32, i32
  }
  func.func @transform_4(%arg0: i32) -> (i32, i32) {
    %c0_i32 = arith.constant 0 : i32
    %c0_i32_0 = arith.constant 0 : i32
    %c0_i32_1 = arith.constant 0 : i32
    return %c0_i32, %c0_i32_0 : i32, i32
  }
  func.func @transform_5(%arg0: i32) -> (i32, i32) {
    %c0_i32 = arith.constant 0 : i32
    %c0_i32_0 = arith.constant 0 : i32
    %c0_i32_1 = arith.constant 0 : i32
    return %c0_i32, %c0_i32_0 : i32, i32
  }
  func.func @transform_6(%arg0: i32) -> (i32, i32) {
    %c0_i32 = arith.constant 0 : i32
    %c0_i32_0 = arith.constant 0 : i32
    %c0_i32_1 = arith.constant 0 : i32
    return %c0_i32, %c0_i32_0 : i32, i32
  }
  func.func @transform_7(%arg0: i32) -> (i32, i32) {
    %c0_i32 = arith.constant 0 : i32
    %c0_i32_0 = arith.constant 0 : i32
    %c0_i32_1 = arith.constant 0 : i32
    return %c0_i32, %c0_i32_0 : i32, i32
  }
  func.func @transform_8(%arg0: i32) -> (i32, i32) {
    %c0_i32 = arith.constant 0 : i32
    %c0_i32_0 = arith.constant 0 : i32
    %c0_i32_1 = arith.constant 0 : i32
    return %c0_i32, %c0_i32_0 : i32, i32
  }
  func.func @transform_9(%arg0: i32) -> (i32, i32) {
    %c0_i32 = arith.constant 0 : i32
    %c0_i32_0 = arith.constant 0 : i32
    return %arg0, %c0_i32 : i32, i32
  }
}

</mosaic_0001>

<bundles_post_ra>
// kernel: mlp_forward_pallas.1
= control target key start
LH: loop header
LB: loop body
LE: loop exit
PB: predicated region body
PF: predicated region fallthrough
CT: control target
= control target key end

     0   :  { %14 = vsyncpa [#allocation4], 0  ;;  %s1087_s0 = inlined_call_operand.vmem [shape: f32[16,16], index: 0, kind: input, shape index: {}]   ;;  %s1088_s1 = inlined_call_operand.hbm [shape: bf16[128,128], index: 1, kind: input, shape index: {}]   ;;  %s1089_s2 = inlined_call_operand.vmem [shape: f32[1,128], index: 2, kind: input, shape index: {}]   ;;  %s1090_s3 = inlined_call_operand.hbm [shape: bf16[128,128], index: 3, kind: input, shape index: {}]   ;;  %s1091_s4 = inlined_call_operand.vmem [shape: f32[1,128], index: 4, kind: input, shape index: {}]   ;;  %s1092_s5 = inlined_call_operand.hbm [shape: bf16[128,128], index: 5, kind: input, shape index: {}]   ;;  %s1093_s6 = inlined_call_operand.vmem [shape: f32[1,128], index: 6, kind: input, shape index: {}]   ;;  %s1094_s7 = inlined_call_operand.hbm [shape: bf16[128,128], index: 7, kind: input, shape index: {}]   ;;  %s1095_s8 = inlined_call_operand.vmem [shape: f32[1,128], index: 8, kind: input, shape index: {}]   ;;  %s1096_s9 = inlined_call_operand.vmem [shape: bf16[16,128], index: 9, kind: output, shape index: {}]  }
   0x1   :  { %15 = vsyncpa [#allocation6], 0 }
   0x2   :  { %16 = vsyncpa [#allocation9], 0  ;;  %s885_s30 = smov [#allocation5]   ;;  %s886_s11 = smov [#allocation3]  }
   0x3   :  { %s38_s10 = sshll.u32 %s885_s30, 4  ;;  %s24_s12 = sshll.u32 %s886_s11, 4  ;;  %s39_s10 = int_to_ptr.vmem [resolvable:$true] %s38_s10  ;;  %s945_s12 = int_to_ptr.vmem [resolvable:$true] %s24_s12 }
   0x4   :  { %s791_s15 = scalar_lea.hbm %s1090_s3, 1024 }
   0x5   :  { %p792_p0 = scmp.ne.s32.totalorder %s1090_s3, %s791_s15  ;;  %p795_p1 = scmp.lt.u32.totalorder %s791_s15, %s1090_s3 }
   0x7   :  { %p797_p2 = pnand %p795_p1, %p792_p0 }
   0x9   :  { %800 = shalt.err (!%p797_p2)
}
   0xa   :  { %s801_s20 = scalar_lea.vmem %s39_s10, 1024  ;;  %p806_p4 = scmp.lt.s32.totalorder %s39_s10, %s39_s10 }
   0xb   :  { %p802_p3 = scmp.ne.s32.totalorder %s39_s10, %s801_s20  ;;  %p807_p5 = scmp.lt.s32.totalorder %s801_s20, %s801_s20 }
   0xd   :  { %p808_p6 = por %p807_p5, %p806_p4 }
   0xf   :  { %p809_p7 = pnand %p808_p6, %p802_p3 }
  0x11   :  { %812 = shalt.err (!%p809_p7)
}
  0x12   :  { %s887_s21 = smov 64   ;;  %s888_s22 = smov 4  }
  0x13   :  { %44 = dma.hbm_to_vmem [thread:$0]  %s1090_s3, 1024, %s39_s10, [#allocation6], %s887_s21, %s887_s21, %s888_s22  }
  0x14   :  { %s813_s27 = scalar_lea.hbm %s1088_s1, 1024 }
  0x15   :  { %p814_p8 = scmp.ne.s32.totalorder %s1088_s1, %s813_s27  ;;  %p817_p9 = scmp.lt.u32.totalorder %s813_s27, %s1088_s1 }
  0x17   :  { %p819_p10 = pnand %p817_p9, %p814_p8 }
  0x19   :  { %822 = shalt.err (!%p819_p10)
}
  0x1a   :  { %s823_s13 = scalar_lea.vmem %s945_s12, 1024  ;;  %p828_p12 = scmp.lt.s32.totalorder %s945_s12, %s945_s12 }
  0x1b   :  { %p824_p11 = scmp.ne.s32.totalorder %s945_s12, %s823_s13  ;;  %p829_p13 = scmp.lt.s32.totalorder %s823_s13, %s823_s13 }
  0x1d   :  { %p830_p0 = por %p829_p13, %p828_p12 }
  0x1f   :  { %p831_p1 = pnand %p830_p0, %p824_p11 }
  0x21   :  { %834 = shalt.err (!%p831_p1)
}
  0x22   :  { %30 = dma.hbm_to_vmem [thread:$0]  %s1088_s1, 1024, %s945_s12, [#allocation4], %s887_s21, %s887_s21, %s888_s22  }
  0x23   :  { %s889_s14 = smov [#allocation7]   ;;  %s890_s16 = smov [#allocation8]  }
  0x24   :  { %s52_s15 = sshll.u32 %s889_s14, 4  ;;  %s66_s17 = sshll.u32 %s890_s16, 4  ;;  %s53_s15 = int_to_ptr.vmem [resolvable:$true] %s52_s15  ;;  %s982_s17 = int_to_ptr.vmem [resolvable:$true] %s66_s17 }
  0x25   :  { %s835_s20 = scalar_lea.hbm %s1092_s5, 1024 }
  0x26   :  { %p836_p2 = scmp.ne.s32.totalorder %s1092_s5, %s835_s20  ;;  %p839_p3 = scmp.lt.u32.totalorder %s835_s20, %s1092_s5 }
  0x28   :  { %p841_p4 = pnand %p839_p3, %p836_p2 }
  0x2a   :  { %844 = shalt.err (!%p841_p4)
}
  0x2b   :  { %s845_s1 = scalar_lea.vmem %s53_s15, 1024  ;;  %p850_p6 = scmp.lt.s32.totalorder %s53_s15, %s53_s15 }
  0x2c   :  { %p846_p5 = scmp.ne.s32.totalorder %s53_s15, %s845_s1  ;;  %p851_p7 = scmp.lt.s32.totalorder %s845_s1, %s845_s1 }
  0x2e   :  { %p852_p8 = por %p851_p7, %p850_p6 }
  0x30   :  { %p853_p9 = pnand %p852_p8, %p846_p5 }
  0x32   :  { %856 = shalt.err (!%p853_p9)
}
  0x33   :  { %58 = dma.hbm_to_vmem [thread:$0]  %s1092_s5, 1024, %s53_s15, [#allocation6], %s887_s21, %s887_s21, %s888_s22  }
  0x34   :  { %s857_s30 = scalar_lea.hbm %s1094_s7, 1024 }
  0x35   :  { %p858_p10 = scmp.ne.s32.totalorder %s1094_s7, %s857_s30  ;;  %p861_p11 = scmp.lt.u32.totalorder %s857_s30, %s1094_s7 }
  0x37   :  { %p863_p12 = pnand %p861_p11, %p858_p10 }
  0x39   :  { %866 = shalt.err (!%p863_p12)
}
  0x3a   :  { %s867_s14 = scalar_lea.vmem %s982_s17, 1024  ;;  %p872_p0 = scmp.lt.s32.totalorder %s982_s17, %s982_s17 }
  0x3b   :  { %p868_p13 = scmp.ne.s32.totalorder %s982_s17, %s867_s14  ;;  %p873_p1 = scmp.lt.s32.totalorder %s867_s14, %s867_s14 }
  0x3d   :  { %p874_p2 = por %p873_p1, %p872_p0 }
  0x3f   :  { %p875_p3 = pnand %p874_p2, %p868_p13 }
  0x41   :  { %878 = shalt.err (!%p875_p3)
}
  0x42   :  { %72 = dma.hbm_to_vmem [thread:$0]  %s1094_s7, 1024, %s982_s17, [#allocation9], %s887_s21, %s887_s21, %s888_s22  }
  0x43   :  { %879 = dma.done.wait [#allocation4], 1024  }
  0x44   :  { %880 = vsyncadd [#allocation4], 4294966272 }
  0x45   :  { %881 = dma.done.wait [#allocation6], 2048  }
  0x46   :  { %882 = vsyncadd [#allocation6], 4294965248 }
  0x47   :  { %883 = dma.done.wait [#allocation9], 1024  }
  0x48   :  { %884 = vsyncadd [#allocation9], 4294966272  ;;  %v891_v0 = vmov 0.0   ;;  %vm892_vm0 = vmmov 0   ;;  %v893_v1 = vmov 0   ;;  %v753_v2 = vld [vmem:[#allocation3] sm:$0xff]  }
  0x49   :  { %663 = vmatprep.subr.bf16.mxu0 %v891_v0  ;;  %679 = vmatprep.mubr.msk.bf16.mxu0 %vm892_vm0, %v891_v0  ;;  %92 = vst [vmem:[#allocation2] sm:$0xff] %v893_v1  ;;  %v754_v3 = vld [vmem:[#allocation3 + $0x8] sm:$0xff]   ;;  %v755_v4 = vld [vmem:[#allocation3 + $0x10] sm:$0xff]   ;;  %v89_v5 = vld [vmem:[%s1087_s0] sm:$0xff]  ;;  %vm93_vm1 = vcmask 130048  }
  0x4a   :  { %683 = vmatprep.subr.bf16.mxu1 %v891_v0  ;;  %699 = vmatprep.mubr.msk.bf16.mxu1 %vm892_vm0, %v891_v0  ;;  %v90_v6 = vld [vmem:[%s1087_s0 + $0x8] sm:$0xff]  ;;  %v756_v7 = vld [vmem:[#allocation3 + $0x18] sm:$0xff]   ;;  %v758_v11 = vld [vmem:[#allocation3 + $0x28] sm:$0xff]   ;;  %v894_v34 = vmov 1065369472  }
  0x4b   :  { %664 = vmatpush3.bf16.msra.mxu0 %v753_v2  ;;  %v91_v8 = vpack.c.bf16 %v90_v6, %v89_v5  ;;  %v761_v9 = vld [vmem:[#allocation5] sm:$0xff]   ;;  %v759_v12 = vld [vmem:[#allocation3 + $0x30] sm:$0xff]   ;;  %v760_v13 = vld [vmem:[#allocation3 + $0x38] sm:$0xff]  }
  0x4c   :  { %665 = vmatprep.subr.bf16.mxu0 %v891_v0  ;;  %684 = vmatpush3.bf16.msra.mxu1 %v761_v9  ;;  %v757_v10 = vld [vmem:[#allocation3 + $0x20] sm:$0xff]   ;;  %v762_v15 = vld [vmem:[#allocation5 + $0x8] sm:$0xff]   ;;  %v763_v16 = vld [vmem:[#allocation5 + $0x10] sm:$0xff]  }
  0x4d   :  { %94 = vst.msk [vmem:[#allocation2] sm:$0xff] %vm93_vm1, %v91_v8  ;;  %685 = vmatprep.subr.bf16.mxu1 %v891_v0  ;;  %v764_v17 = vld [vmem:[#allocation5 + $0x18] sm:$0xff]   ;;  %v765_v18 = vld [vmem:[#allocation5 + $0x20] sm:$0xff]   ;;  %v766_v19 = vld [vmem:[#allocation5 + $0x28] sm:$0xff]  }
  0x4e   :  { %v767_v20 = vld [vmem:[#allocation5 + $0x30] sm:$0xff]   ;;  %v768_v21 = vld [vmem:[#allocation5 + $0x38] sm:$0xff]   ;;  %v769_v22 = vld [vmem:[#allocation7] sm:$0xff]  }
  0x4f   :  { %666 = vmatpush3.bf16.msra.mxu0 %v754_v3  ;;  %v582_v23 = vld [vmem:[%s1089_s2] ss:$0 sm:$0xff]  ;;  %v770_v37 = vld [vmem:[#allocation7 + $0x8] sm:$0xff]   ;;  %v771_v38 = vld [vmem:[#allocation7 + $0x10] sm:$0xff]  }
  0x50   :  { %667 = vmatprep.subr.bf16.mxu0 %v891_v0  ;;  %686 = vmatpush3.bf16.msra.mxu1 %v762_v15  ;;  %v772_v39 = vld [vmem:[#allocation7 + $0x18] sm:$0xff]   ;;  %v773_v40 = vld [vmem:[#allocation7 + $0x20] sm:$0xff]   ;;  %v774_v41 = vld [vmem:[#allocation7 + $0x28] sm:$0xff]  }
  0x51   :  { %687 = vmatprep.subr.bf16.mxu1 %v891_v0  ;;  %v775_v42 = vld [vmem:[#allocation7 + $0x30] sm:$0xff]   ;;  %v776_v43 = vld [vmem:[#allocation7 + $0x38] sm:$0xff]   ;;  %v777_v44 = vld [vmem:[#allocation8] sm:$0xff]  }
  0x52   :  { %v591_v45 = vld [vmem:[%s1091_s4] ss:$0 sm:$0xff]  ;;  %v778_v58 = vld [vmem:[#allocation8 + $0x8] sm:$0xff]   ;;  %v779_v59 = vld [vmem:[#allocation8 + $0x10] sm:$0xff]  }
  0x53   :  { %668 = vmatpush3.bf16.msra.mxu0 %v755_v4  ;;  %v780_v60 = vld [vmem:[#allocation8 + $0x18] sm:$0xff]   ;;  %v781_v61 = vld [vmem:[#allocation8 + $0x20] sm:$0xff]   ;;  %v782_v62 = vld [vmem:[#allocation8 + $0x28] sm:$0xff]  }
  0x54   :  { %669 = vmatprep.subr.bf16.mxu0 %v891_v0  ;;  %v95_v14 = vld [vmem:[#allocation2] sm:$0xff]  ;;  %688 = vmatpush3.bf16.msra.mxu1 %v763_v16  ;;  %v783_v63 = vld [vmem:[#allocation8 + $0x30] sm:$0xff]  }
  0x55   :  { %689 = vmatprep.subr.bf16.mxu1 %v891_v0  ;;  %v784_v2 = vld [vmem:[#allocation8 + $0x38] sm:$0xff]  }
  0x56   :  { %v600_v3 = vld [vmem:[%s1093_s6] ss:$0 sm:$0xff] }
  0x57   :  { %670 = vmatpush3.bf16.msra.mxu0 %v756_v7  ;;  %v609_v15 = vld [vmem:[%s1095_s8] ss:$0 sm:$0xff] }
  0x58   :  { %671 = vmatprep.subr.bf16.mxu0 %v891_v0  ;;  %690 = vmatpush3.bf16.msra.mxu1 %v764_v17 }
  0x59   :  { %691 = vmatprep.subr.bf16.mxu1 %v891_v0 }
  0x5b   :  { %672 = vmatpush3.bf16.msra.mxu0 %v757_v10 }
  0x5c   :  { %673 = vmatprep.subr.bf16.mxu0 %v891_v0  ;;  %692 = vmatpush3.bf16.msra.mxu1 %v765_v18 }
  0x5d   :  { %693 = vmatprep.subr.bf16.mxu1 %v891_v0 }
  0x5f   :  { %674 = vmatpush3.bf16.msra.mxu0 %v758_v11 }
  0x60   :  { %675 = vmatprep.subr.bf16.mxu0 %v891_v0  ;;  %694 = vmatpush3.bf16.msra.mxu1 %v766_v19 }
  0x61   :  { %695 = vmatprep.subr.bf16.mxu1 %v891_v0 }
  0x63   :  { %676 = vmatpush3.bf16.msra.mxu0 %v759_v12 }
  0x64   :  { %677 = vmatprep.subr.bf16.mxu0 %v891_v0  ;;  %696 = vmatpush3.bf16.msra.mxu1 %v767_v20 }
  0x65   :  { %697 = vmatprep.subr.bf16.mxu1 %v891_v0 }
  0x67   :  { %678 = vmatpush3.bf16.msra.mxu0 %v760_v13 }
  0x68   :  { %703 = vmatprep.subr.bf16.mxu0 %v891_v0  ;;  %698 = vmatpush3.bf16.msra.mxu1 %v768_v21 }
  0x69   :  { %723 = vmatprep.subr.bf16.mxu1 %v891_v0 }
  0x6a   :  { %680 = vmatmul.mubr.bf16.vlgmr.msra.gmra.mrb[0].mxu0 %v95_v14 }
  0x6b   :  { %719 = vmatprep.mubr.msk.bf16.mxu0 %vm892_vm0, %v891_v0  ;;  %704 = vmatpush3.bf16.msra.mxu0 %v769_v22 }
  0x6c   :  { %705 = vmatprep.subr.bf16.mxu0 %v891_v0 }
  0x6f   :  { %706 = vmatpush3.bf16.msra.mxu0 %v770_v37 }
  0x70   :  { %707 = vmatprep.subr.bf16.mxu0 %v891_v0 }
  0x73   :  { %708 = vmatpush3.bf16.msra.mxu0 %v771_v38 }
  0x74   :  { %709 = vmatprep.subr.bf16.mxu0 %v891_v0 }
  0x77   :  { %710 = vmatpush3.bf16.msra.mxu0 %v772_v39 }
  0x78   :  { %711 = vmatprep.subr.bf16.mxu0 %v891_v0 }
  0x7b   :  { %712 = vmatpush3.bf16.msra.mxu0 %v773_v40 }
  0x7c   :  { %713 = vmatprep.subr.bf16.mxu0 %v891_v0 }
  0x7f   :  { %714 = vmatpush3.bf16.msra.mxu0 %v774_v41 }
  0x80   :  { %715 = vmatprep.subr.bf16.mxu0 %v891_v0 }
  0x83   :  { %716 = vmatpush3.bf16.msra.mxu0 %v775_v42 }
  0x84   :  { %717 = vmatprep.subr.bf16.mxu0 %v891_v0 }
  0x87   :  { %718 = vmatpush3.bf16.msra.mxu0 %v776_v43 }
 0x13d   :  { %v252_v24 = vpop.f32.mrb[0].mxu0 }
 0x13e   :  { %v681_v25 = vpop.f32.mrb[1].mxu0  ;;  %v253_v27 = vadd.f32 %v582_v23, %v252_v24 }
 0x13f   :  { %v255_v26 = vpop.f32.mrb[2].mxu0 }
 0x140   :  { %v256_v28 = vadd.f32 %v582_v23, %v255_v26  ;;  %v682_v29 = vpop.f32.mrb[3].mxu0 }
 0x142   :  { %v259_v30 = vpack.c.bf16 %v256_v28, %v253_v27 }
 0x144   :  { %v260_v31 = vmin.bf16 %v893_v1, %v259_v30 }
 0x146   :  { %v262_v32 = vmul.bf16 1069105081, %v260_v31 }
 0x148   :  { %785 = vpow.bf16 %v262_v32 }
 0x153   :  { %v786_v33 = vpop.eup %785 }
 0x154   :  { %v264_v35 = vsub.bf16 %v786_v33, %v894_v34 }
 0x156   :  { %v265_v36 = vmax.bf16 %v264_v35, %v259_v30 }
 0x158   :  { %700 = vmatmul.mubr.bf16.vlgmr.msra.gmra.mrb[0].mxu1 %v265_v36 }
 0x159   :  { %739 = vmatprep.mubr.msk.bf16.mxu1 %vm892_vm0, %v891_v0  ;;  %724 = vmatpush3.bf16.msra.mxu1 %v777_v44 }
 0x15a   :  { %725 = vmatprep.subr.bf16.mxu1 %v891_v0 }
 0x15d   :  { %726 = vmatpush3.bf16.msra.mxu1 %v778_v58 }
 0x15e   :  { %727 = vmatprep.subr.bf16.mxu1 %v891_v0 }
 0x161   :  { %728 = vmatpush3.bf16.msra.mxu1 %v779_v59 }
 0x162   :  { %729 = vmatprep.subr.bf16.mxu1 %v891_v0 }
 0x165   :  { %730 = vmatpush3.bf16.msra.mxu1 %v780_v60 }
 0x166   :  { %731 = vmatprep.subr.bf16.mxu1 %v891_v0 }
 0x169   :  { %732 = vmatpush3.bf16.msra.mxu1 %v781_v61 }
 0x16a   :  { %733 = vmatprep.subr.bf16.mxu1 %v891_v0 }
 0x16d   :  { %734 = vmatpush3.bf16.msra.mxu1 %v782_v62 }
 0x16e   :  { %735 = vmatprep.subr.bf16.mxu1 %v891_v0 }
 0x171   :  { %736 = vmatpush3.bf16.msra.mxu1 %v783_v63 }
 0x172   :  { %737 = vmatprep.subr.bf16.mxu1 %v891_v0 }
 0x175   :  { %738 = vmatpush3.bf16.msra.mxu1 %v784_v2 }
 0x22b   :  { %v354_v46 = vpop.f32.mrb[0].mxu1 }
 0x22c   :  { %v701_v47 = vpop.f32.mrb[1].mxu1  ;;  %v355_v49 = vadd.f32 %v591_v45, %v354_v46 }
 0x22d   :  { %v357_v48 = vpop.f32.mrb[2].mxu1 }
 0x22e   :  { %v358_v50 = vadd.f32 %v591_v45, %v357_v48  ;;  %v702_v51 = vpop.f32.mrb[3].mxu1 }
 0x230   :  { %v361_v52 = vpack.c.bf16 %v358_v50, %v355_v49 }
 0x232   :  { %v362_v53 = vmin.bf16 %v893_v1, %v361_v52 }
 0x234   :  { %v364_v54 = vmul.bf16 1069105081, %v362_v53 }
 0x236   :  { %787 = vpow.bf16 %v364_v54 }
 0x241   :  { %v788_v55 = vpop.eup %787 }
 0x242   :  { %v366_v56 = vsub.bf16 %v788_v55, %v894_v34 }
 0x244   :  { %v367_v57 = vmax.bf16 %v366_v56, %v361_v52 }
 0x246   :  { %720 = vmatmul.mubr.bf16.vlgmr.msra.gmra.mrb[4].mxu0 %v367_v57 }
 0x319   :  { %v456_v4 = vpop.f32.mrb[4].mxu0 }
 0x31a   :  { %v721_v5 = vpop.f32.mrb[5].mxu0  ;;  %v457_v7 = vadd.f32 %v600_v3, %v456_v4 }
 0x31b   :  { %v459_v6 = vpop.f32.mrb[6].mxu0 }
 0x31c   :  { %v460_v8 = vadd.f32 %v600_v3, %v459_v6  ;;  %v722_v9 = vpop.f32.mrb[7].mxu0 }
 0x31e   :  { %v463_v10 = vpack.c.bf16 %v460_v8, %v457_v7 }
 0x320   :  { %v464_v11 = vmin.bf16 %v893_v1, %v463_v10 }
 0x322   :  { %v466_v12 = vmul.bf16 1069105081, %v464_v11 }
 0x324   :  { %789 = vpow.bf16 %v466_v12 }
 0x32f   :  { %v790_v13 = vpop.eup %789 }
 0x330   :  { %v468_v0 = vsub.bf16 %v790_v13, %v894_v34 }
 0x332   :  { %v469_v14 = vmax.bf16 %v468_v0, %v463_v10 }
 0x334   :  { %740 = vmatmul.mubr.bf16.vlgmr.msra.gmra.mrb[4].mxu1 %v469_v14 }
 0x407   :  { %v558_v16 = vpop.f32.mrb[4].mxu1 }
 0x408   :  { %v741_v17 = vpop.f32.mrb[5].mxu1  ;;  %v559_v19 = vadd.f32 %v609_v15, %v558_v16 }
 0x409   :  { %v561_v18 = vpop.f32.mrb[6].mxu1 }
 0x40a   :  { %v562_v20 = vadd.f32 %v609_v15, %v561_v18  ;;  %v742_v21 = vpop.f32.mrb[7].mxu1 }
 0x40c   :  { %v625_v22 = vpack.c.bf16 %v562_v20, %v559_v19 }
 0x40e   :  { %626 = vst [vmem:[%s1096_s9] sm:$0xff] %v625_v22  }
 0x40f   :  { %579 = vsyncpa [#allocation4], 1 }
 0x410   :  { %580 = vsyncpa [#allocation6], 1 }
 0x411   :  { %581 = vsyncpa [#allocation9], 1 }

</bundles_post_ra>
